<compile_context>
chip_gen: v7x
topology: tpu7x:2x2x1
jax: 0.10.0
libtpu: 0.0.40
codegen_flags: <defaults>
</compile_context>

<pallas_src>
import functools

import jax
import jax.numpy as jnp
from jax.experimental import pallas as pl
from jax.experimental.pallas import tpu as pltpu

K_IN = 784        # true input features
H_TRUE = 32       # true hidden width
N_TRUE = 10       # true number of classes
K_PAD = 896       # 7 * 128 (lane-dense contraction dim)
H_PAD = 128       # lane-dense hidden dim
N_PAD = 128       # lane-dense output dim


def _round_up(x, m):
    return ((x + m - 1) // m) * m


def mlp_kernel(x_ref, w1_ref, b1_ref, w2_ref, b2_ref, o_ref):
    # x: (TB, 896), w1: (896, 128), b1: (1, 128), w2: (128, 128), b2: (1, 128)
    h = jnp.dot(x_ref[...], w1_ref[...],
                preferred_element_type=jnp.float32) + b1_ref[...]
    h = jnp.maximum(h, 0.0)  # ReLU; padded hidden columns stay exactly 0
    out = jnp.dot(h, w2_ref[...],
                  preferred_element_type=jnp.float32) + b2_ref[...]
    o_ref[...] = out.astype(o_ref.dtype)


def prepare_params(w1, b1, w2, b2):
    """One-time prep: transpose to (in, out) and zero-pad to lane-dense shapes.

    w1: (32, 784), b1: (32,), w2: (10, 32), b2: (10,)  -- PyTorch layout.
    """
    w1t = jnp.zeros((K_PAD, H_PAD), jnp.float32)
    w1t = w1t.at[:K_IN, :H_TRUE].set(jnp.transpose(w1).astype(jnp.float32))
    b1p = jnp.zeros((1, H_PAD), jnp.float32)
    b1p = b1p.at[0, :H_TRUE].set(b1.astype(jnp.float32))
    w2t = jnp.zeros((H_PAD, N_PAD), jnp.float32)
    w2t = w2t.at[:H_TRUE, :N_TRUE].set(jnp.transpose(w2).astype(jnp.float32))
    b2p = jnp.zeros((1, N_PAD), jnp.float32)
    b2p = b2p.at[0, :N_TRUE].set(b2.astype(jnp.float32))
    return w1t, b1p, w2t, b2p


@functools.partial(jax.jit, static_argnames=("tb_max",))
def mnist_dnn_forward(x, w1t, b1p, w2t, b2p, *, tb_max=1024):
    """Forward pass. x: (B, 1, 28, 28) or (B, 784) -> (B, 10) logits."""
    B = x.shape[0]
    x2d = jnp.reshape(x, (B, K_IN)).astype(jnp.float32)

    # Batch tile: multiple of 8 sublanes, capped for VMEM (v7x has 64 MiB).
    TB = min(tb_max, _round_up(B, 8))
    Bp = _round_up(B, TB)

    # Zero-pad batch to a multiple of TB and K to 896 lanes.
    xp = jnp.zeros((Bp, K_PAD), jnp.float32).at[:B, :K_IN].set(x2d)

    out = pl.pallas_call(
        mlp_kernel,
        out_shape=jax.ShapeDtypeStruct((Bp, N_PAD), jnp.float32),
        grid=(Bp // TB,),
        in_specs=[
            pl.BlockSpec((TB, K_PAD), lambda i: (i, 0)),      # x tile (streamed)
            pl.BlockSpec((K_PAD, H_PAD), lambda i: (0, 0)),   # w1 (resident)
            pl.BlockSpec((1, H_PAD), lambda i: (0, 0)),       # b1
            pl.BlockSpec((H_PAD, N_PAD), lambda i: (0, 0)),   # w2
            pl.BlockSpec((1, N_PAD), lambda i: (0, 0)),       # b2
        ],
        out_specs=pl.BlockSpec((TB, N_PAD), lambda i: (i, 0)),
        compiler_params=pltpu.CompilerParams(
            dimension_semantics=("parallel",),
            vmem_limit_bytes=32 * 1024 * 1024,
        ),
    )(xp, w1t, b1p, w2t, b2p)

    return out[:B, :N_TRUE]


def init_params(key):
    k1, k2, k3, k4 = jax.random.split(key, 4)
    # Shapes match nn.Linear(784, 32) and nn.Linear(32, 10) (out, in) layout.
    w1 = jax.random.normal(k1, (H_TRUE, K_IN), dtype=jnp.float32) * 0.05
    b1 = jax.random.normal(k2, (H_TRUE,), dtype=jnp.float32) * 0.05
    w2 = jax.random.normal(k3, (N_TRUE, H_TRUE), dtype=jnp.float32) * 0.05
    b2 = jax.random.normal(k4, (N_TRUE,), dtype=jnp.float32) * 0.05
    return w1, b1, w2, b2


if __name__ == "__main__":
    key = jax.random.PRNGKey(0)
    kx, kp = jax.random.split(key)
    B = 2
    x = jax.random.normal(kx, (B, 1, 28, 28), dtype=jnp.float32)  # NCHW MNIST
    w1, b1, w2, b2 = init_params(kp)

    # One-time parameter prep (transpose + lane-dense padding).
    w1t, b1p, w2t, b2p = prepare_params(w1, b1, w2, b2)

    out = mnist_dnn_forward(x, w1t, b1p, w2t, b2p)
    out = jax.block_until_ready(out)

    # Reference check in plain JAX (same semantics as the PyTorch forward).
    xf = jnp.reshape(x, (B, K_IN))
    h_ref = jnp.maximum(xf @ w1.T + b1, 0.0)
    ref = h_ref @ w2.T + b2
    assert out.shape == (B, N_TRUE)
    assert jnp.allclose(out, ref, atol=1e-4, rtol=1e-4)
    print("KERNEL_OK")
</pallas_src>

<mosaic_0001>
module attributes {stable_mosaic.version = 11 : i64} {
  func.func @mlp_kernel(%arg0: i32, %arg1: memref<8x896xf32, #tpu.memory_space<vmem>>, %arg2: memref<896x128xf32, #tpu.memory_space<vmem>>, %arg3: memref<1x128xf32, #tpu.memory_space<vmem>>, %arg4: memref<128x128xf32, #tpu.memory_space<vmem>>, %arg5: memref<1x128xf32, #tpu.memory_space<vmem>>, %arg6: memref<8x128xf32, #tpu.memory_space<vmem>>) attributes {dimension_semantics = [#tpu.dimension_semantics<parallel>], iteration_bounds = array<i64: 1>, scalar_prefetch = 0 : i64, scratch_operands = 0 : i64, tpu.core_type = #tpu.core_type<tc>, window_params = [{transform_indices = @transform_0, window_bounds = array<i64: 8, 896>}, {pipeline_mode = #tpu.pipeline_mode<synchronous>, transform_indices = @transform_1, window_bounds = array<i64: 896, 128>}, {pipeline_mode = #tpu.pipeline_mode<synchronous>, transform_indices = @transform_2, window_bounds = array<i64: 1, 128>}, {pipeline_mode = #tpu.pipeline_mode<synchronous>, transform_indices = @transform_3, window_bounds = array<i64: 128, 128>}, {pipeline_mode = #tpu.pipeline_mode<synchronous>, transform_indices = @transform_4, window_bounds = array<i64: 1, 128>}, {transform_indices = @transform_5, window_bounds = array<i64: 8, 128>}]} {
    %c0 = arith.constant 0 : index
    %c0_0 = arith.constant 0 : index
    %0 = vector.load %arg1[%c0, %c0_0] : memref<8x896xf32, #tpu.memory_space<vmem>>, vector<8x896xf32>
    %c0_1 = arith.constant 0 : index
    %c0_2 = arith.constant 0 : index
    %1 = vector.load %arg2[%c0_1, %c0_2] : memref<896x128xf32, #tpu.memory_space<vmem>>, vector<896x128xf32>
    %cst = arith.constant dense<0.000000e+00> : vector<8x128xf32>
    %2 = tpu.matmul %0, %1, %cst {dimension_numbers = #tpu.dot_dimension_numbers<[1], [0], [0], [1], [0, 0, 1, 1], [], []>} : vector<8x896xf32>, vector<896x128xf32>, vector<8x128xf32> -> vector<8x128xf32>
    %c0_3 = arith.constant 0 : index
    %c0_4 = arith.constant 0 : index
    %3 = vector.load %arg3[%c0_3, %c0_4] : memref<1x128xf32, #tpu.memory_space<vmem>>, vector<1x128xf32>
    %4 = vector.broadcast %3 : vector<1x128xf32> to vector<8x128xf32>
    %5 = arith.addf %2, %4 : vector<8x128xf32>
    %cst_5 = arith.constant 0.000000e+00 : f32
    %6 = vector.broadcast %cst_5 : f32 to vector<8x128xf32>
    %7 = arith.maximumf %5, %6 : vector<8x128xf32>
    %c0_6 = arith.constant 0 : index
    %c0_7 = arith.constant 0 : index
    %8 = vector.load %arg4[%c0_6, %c0_7] : memref<128x128xf32, #tpu.memory_space<vmem>>, vector<128x128xf32>
    %cst_8 = arith.constant dense<0.000000e+00> : vector<8x128xf32>
    %9 = tpu.matmul %7, %8, %cst_8 {dimension_numbers = #tpu.dot_dimension_numbers<[1], [0], [0], [1], [0, 0, 1, 1], [], []>} : vector<8x128xf32>, vector<128x128xf32>, vector<8x128xf32> -> vector<8x128xf32>
    %c0_9 = arith.constant 0 : index
    %c0_10 = arith.constant 0 : index
    %10 = vector.load %arg5[%c0_9, %c0_10] : memref<1x128xf32, #tpu.memory_space<vmem>>, vector<1x128xf32>
    %11 = vector.broadcast %10 : vector<1x128xf32> to vector<8x128xf32>
    %12 = arith.addf %9, %11 : vector<8x128xf32>
    %c0_11 = arith.constant 0 : index
    %c0_12 = arith.constant 0 : index
    %13 = vector.load %arg6[%c0_11, %c0_12] : memref<8x128xf32, #tpu.memory_space<vmem>>, vector<8x128xf32>
    tpu.vector_store %arg6[%c0_11, %c0_12], %12 {strides = array<i32>} : memref<8x128xf32, #tpu.memory_space<vmem>>, vector<8x128xf32>,
    return
  }
  func.func @transform_0(%arg0: i32) -> (i32, i32) {
    %c0_i32 = arith.constant 0 : i32
    %c0_i32_0 = arith.constant 0 : i32
    return %arg0, %c0_i32 : i32, i32
  }
  func.func @transform_1(%arg0: i32) -> (i32, i32) {
    %c0_i32 = arith.constant 0 : i32
    %c0_i32_0 = arith.constant 0 : i32
    %c0_i32_1 = arith.constant 0 : i32
    return %c0_i32, %c0_i32_0 : i32, i32
  }
  func.func @transform_2(%arg0: i32) -> (i32, i32) {
    %c0_i32 = arith.constant 0 : i32
    %c0_i32_0 = arith.constant 0 : i32
    %c0_i32_1 = arith.constant 0 : i32
    return %c0_i32, %c0_i32_0 : i32, i32
  }
  func.func @transform_3(%arg0: i32) -> (i32, i32) {
    %c0_i32 = arith.constant 0 : i32
    %c0_i32_0 = arith.constant 0 : i32
    %c0_i32_1 = arith.constant 0 : i32
    return %c0_i32, %c0_i32_0 : i32, i32
  }
  func.func @transform_4(%arg0: i32) -> (i32, i32) {
    %c0_i32 = arith.constant 0 : i32
    %c0_i32_0 = arith.constant 0 : i32
    %c0_i32_1 = arith.constant 0 : i32
    return %c0_i32, %c0_i32_0 : i32, i32
  }
  func.func @transform_5(%arg0: i32) -> (i32, i32) {
    %c0_i32 = arith.constant 0 : i32
    %c0_i32_0 = arith.constant 0 : i32
    return %arg0, %c0_i32 : i32, i32
  }
}

</mosaic_0001>

<bundles_post_ra>
// kernel: mnist_dnn_forward.1
= control target key start
LH: loop header
LB: loop body
LE: loop exit
PB: predicated region body
PF: predicated region fallthrough
CT: control target
= control target key end

     0   :  { %10 = vsyncpa [#allocation3], 0  ;;  %s925_s18 = smov [#allocation2]   ;;  %s1071_s0 = inlined_call_operand.vmem [shape: f32[8,896], index: 0, kind: input, shape index: {}]   ;;  %s1072_s1 = inlined_call_operand.hbm [shape: f32[896,128], index: 1, kind: input, shape index: {}]   ;;  %s1073_s2 = inlined_call_operand.vmem [shape: f32[1,128], index: 2, kind: input, shape index: {}]   ;;  %s1074_s3 = inlined_call_operand.vmem [shape: f32[128,128], index: 3, kind: input, shape index: {}]   ;;  %s1075_s4 = inlined_call_operand.vmem [shape: f32[1,128], index: 4, kind: input, shape index: {}]   ;;  %s1076_s5 = inlined_call_operand.vmem [shape: f32[8,128], index: 5, kind: output, shape index: {}]  }
   0x1   :  { %s18_s19 = sshll.u32 %s925_s18, 4  ;;  %s901_s22 = scalar_lea.hbm %s1072_s1, 14336  ;;  %s19_s19 = int_to_ptr.vmem [resolvable:$true] %s18_s19 }
   0x2   :  { %p902_p0 = scmp.ne.s32.totalorder %s1072_s1, %s901_s22  ;;  %p905_p1 = scmp.lt.u32.totalorder %s901_s22, %s1072_s1 }
   0x4   :  { %p907_p2 = pnand %p905_p1, %p902_p0 }
   0x6   :  { %910 = shalt.err (!%p907_p2)
}
   0x7   :  { %s911_s27 = scalar_lea.vmem %s19_s19, 14336  ;;  %p916_p4 = scmp.lt.s32.totalorder %s19_s19, %s19_s19 }
   0x8   :  { %p912_p3 = scmp.ne.s32.totalorder %s19_s19, %s911_s27  ;;  %p917_p5 = scmp.lt.s32.totalorder %s911_s27, %s911_s27 }
   0xa   :  { %p918_p6 = por %p917_p5, %p916_p4 }
   0xc   :  { %p919_p7 = pnand %p918_p6, %p912_p3 }
   0xe   :  { %922 = shalt.err (!%p919_p7)
}
   0xf   :  { %s926_s28 = smov 128   ;;  %s927_s29 = smov 8  }
  0x10   :  { %24 = dma.hbm_to_vmem [thread:$0]  %s1072_s1, 14336, %s19_s19, [#allocation3], %s926_s28, %s926_s28, %s927_s29  }
  0x11   :  { %923 = dma.done.wait [#allocation3], 14336  }
  0x12   :  { %924 = vsyncadd [#allocation3], 4294952960  ;;  %v57_v0 = vld [vmem:[#allocation2 + $0x80] sm:$0xff]  ;;  %v58_v1 = vld [vmem:[#allocation2 + $0x88] sm:$0xff]  ;;  %vm929_vm0 = vmmov 0  }
  0x13   :  { %v41_v2 = vld [vmem:[#allocation2] sm:$0xff]  ;;  %v751_v3 = vpack.c.bf16 %v58_v1, %v57_v0  ;;  %v42_v4 = vld [vmem:[#allocation2 + $0x8] sm:$0xff]  ;;  %v59_v11 = vld [vmem:[#allocation2 + $0x90] sm:$0xff] }
  0x14   :  { %v89_v5 = vld [vmem:[#allocation2 + $0x180] sm:$0xff]  ;;  %v90_v6 = vld [vmem:[#allocation2 + $0x188] sm:$0xff]  ;;  %v753_v7 = vpack.c.bf16 %v42_v4, %v41_v2  ;;  %v60_v13 = vld [vmem:[#allocation2 + $0x98] sm:$0xff] }
  0x15   :  { %v783_v8 = vpack.c.bf16 %v90_v6, %v89_v5  ;;  %v73_v9 = vld [vmem:[#allocation2 + $0x100] sm:$0xff]  ;;  %v74_v10 = vld [vmem:[#allocation2 + $0x108] sm:$0xff]  ;;  %752 = vmatprep.subr.bf16.mxu0 %v751_v3  ;;  %v43_v14 = vld [vmem:[#allocation2 + $0x10] sm:$0xff]  ;;  %v755_v16 = vpack.c.bf16 %v60_v13, %v59_v11 }
  0x16   :  { %v785_v12 = vpack.c.bf16 %v74_v10, %v73_v9  ;;  %v44_v15 = vld [vmem:[#allocation2 + $0x18] sm:$0xff]  ;;  %754 = vmatpush3.bf16.msra.mxu0 %v753_v7  ;;  %v91_v18 = vld [vmem:[#allocation2 + $0x190] sm:$0xff]  ;;  %v61_v23 = vld [vmem:[#allocation2 + $0xa0] sm:$0xff] }
  0x17   :  { %784 = vmatprep.subr.bf16.mxu1 %v783_v8  ;;  %v757_v17 = vpack.c.bf16 %v44_v15, %v43_v14  ;;  %v92_v19 = vld [vmem:[#allocation2 + $0x198] sm:$0xff]  ;;  %v75_v20 = vld [vmem:[#allocation2 + $0x110] sm:$0xff]  ;;  %v62_v24 = vld [vmem:[#allocation2 + $0xa8] sm:$0xff]  ;;  %756 = vmatprep.subr.bf16.mxu0 %v755_v16 }
  0x18   :  { %786 = vmatpush3.bf16.msra.mxu1 %v785_v12  ;;  %v787_v21 = vpack.c.bf16 %v92_v19, %v91_v18  ;;  %v76_v22 = vld [vmem:[#allocation2 + $0x118] sm:$0xff]  ;;  %v759_v26 = vpack.c.bf16 %v62_v24, %v61_v23  ;;  %v45_v27 = vld [vmem:[#allocation2 + $0x20] sm:$0xff]  ;;  %v46_v28 = vld [vmem:[#allocation2 + $0x28] sm:$0xff] }
  0x19   :  { %v789_v25 = vpack.c.bf16 %v76_v22, %v75_v20  ;;  %v93_v29 = vld [vmem:[#allocation2 + $0x1a0] sm:$0xff]  ;;  %v94_v30 = vld [vmem:[#allocation2 + $0x1a8] sm:$0xff]  ;;  %v761_v33 = vpack.c.bf16 %v46_v28, %v45_v27  ;;  %v63_v35 = vld [vmem:[#allocation2 + $0xb0] sm:$0xff] }
  0x1a   :  { %788 = vmatprep.subr.bf16.mxu1 %v787_v21  ;;  %v77_v31 = vld [vmem:[#allocation2 + $0x120] sm:$0xff]  ;;  %v78_v32 = vld [vmem:[#allocation2 + $0x128] sm:$0xff]  ;;  %758 = vmatpush3.bf16.msra.mxu0 %v757_v17  ;;  %v791_v34 = vpack.c.bf16 %v94_v30, %v93_v29  ;;  %v64_v36 = vld [vmem:[#allocation2 + $0xb8] sm:$0xff] }
  0x1b   :  { %v47_v37 = vld [vmem:[#allocation2 + $0x30] sm:$0xff]  ;;  %760 = vmatprep.subr.bf16.mxu0 %v759_v26  ;;  %v793_v38 = vpack.c.bf16 %v78_v32, %v77_v31  ;;  %v763_v39 = vpack.c.bf16 %v64_v36, %v63_v35  ;;  %v48_v40 = vld [vmem:[#allocation2 + $0x38] sm:$0xff]  ;;  %v65_v46 = vld [vmem:[#allocation2 + $0xc0] sm:$0xff] }
  0x1c   :  { %790 = vmatpush3.bf16.msra.mxu1 %v789_v25  ;;  %v95_v41 = vld [vmem:[#allocation2 + $0x1b0] sm:$0xff]  ;;  %v96_v42 = vld [vmem:[#allocation2 + $0x1b8] sm:$0xff]  ;;  %v66_v47 = vld [vmem:[#allocation2 + $0xc8] sm:$0xff]  ;;  %v765_v48 = vpack.c.bf16 %v48_v40, %v47_v37 }
  0x1d   :  { %792 = vmatprep.subr.bf16.mxu1 %v791_v34  ;;  %v795_v43 = vpack.c.bf16 %v96_v42, %v95_v41  ;;  %v79_v44 = vld [vmem:[#allocation2 + $0x130] sm:$0xff]  ;;  %v80_v45 = vld [vmem:[#allocation2 + $0x138] sm:$0xff]  ;;  %v97_v49 = vld [vmem:[#allocation2 + $0x1c0] sm:$0xff]  ;;  %v767_v52 = vpack.c.bf16 %v66_v47, %v65_v46 }
  0x1e   :  { %762 = vmatpush3.bf16.msra.mxu0 %v761_v33  ;;  %v98_v50 = vld [vmem:[#allocation2 + $0x1c8] sm:$0xff]  ;;  %v797_v51 = vpack.c.bf16 %v80_v45, %v79_v44  ;;  %v49_v53 = vld [vmem:[#allocation2 + $0x40] sm:$0xff]  ;;  %v67_v58 = vld [vmem:[#allocation2 + $0xd0] sm:$0xff] }
  0x1f   :  { %764 = vmatprep.subr.bf16.mxu0 %v763_v39  ;;  %v50_v54 = vld [vmem:[#allocation2 + $0x48] sm:$0xff]  ;;  %v81_v55 = vld [vmem:[#allocation2 + $0x140] sm:$0xff]  ;;  %v799_v56 = vpack.c.bf16 %v98_v50, %v97_v49  ;;  %v68_v59 = vld [vmem:[#allocation2 + $0xd8] sm:$0xff] }
  0x20   :  { %794 = vmatpush3.bf16.msra.mxu1 %v793_v38  ;;  %v82_v57 = vld [vmem:[#allocation2 + $0x148] sm:$0xff]  ;;  %v99_v60 = vld [vmem:[#allocation2 + $0x1d0] sm:$0xff]  ;;  %v100_v61 = vld [vmem:[#allocation2 + $0x1d8] sm:$0xff]  ;;  %v769_v62 = vpack.c.bf16 %v50_v54, %v49_v53  ;;  %v771_v0 = vpack.c.bf16 %v68_v59, %v67_v58 }
  0x21   :  { %796 = vmatprep.subr.bf16.mxu1 %v795_v43  ;;  %v801_v63 = vpack.c.bf16 %v82_v57, %v81_v55  ;;  %v51_v1 = vld [vmem:[#allocation2 + $0x50] sm:$0xff]  ;;  %v52_v2 = vld [vmem:[#allocation2 + $0x58] sm:$0xff]  ;;  %v803_v4 = vpack.c.bf16 %v100_v61, %v99_v60  ;;  %v69_v6 = vld [vmem:[#allocation2 + $0xe0] sm:$0xff] }
  0x22   :  { %766 = vmatpush3.bf16.msra.mxu0 %v765_v48  ;;  %v83_v3 = vld [vmem:[#allocation2 + $0x150] sm:$0xff]  ;;  %v84_v5 = vld [vmem:[#allocation2 + $0x158] sm:$0xff]  ;;  %v70_v7 = vld [vmem:[#allocation2 + $0xe8] sm:$0xff]  ;;  %v773_v10 = vpack.c.bf16 %v52_v2, %v51_v1  ;;  %v930_v1 = vmov 0.0  }
  0x23   :  { %768 = vmatprep.subr.bf16.mxu0 %v767_v52  ;;  %v101_v8 = vld [vmem:[#allocation2 + $0x1e0] sm:$0xff]  ;;  %v102_v9 = vld [vmem:[#allocation2 + $0x1e8] sm:$0xff]  ;;  %v805_v13 = vpack.c.bf16 %v84_v5, %v83_v3  ;;  %v775_v14 = vpack.c.bf16 %v70_v7, %v69_v6  ;;  %v71_v19 = vld [vmem:[#allocation2 + $0xf0] sm:$0xff] }
  0x24   :  { %798 = vmatpush3.bf16.msra.mxu1 %v797_v51  ;;  %v53_v11 = vld [vmem:[#allocation2 + $0x60] sm:$0xff]  ;;  %v35_v12 = vld [vmem:[%s1071_s0 + $0x8] sm:$0xff]  ;;  %v807_v18 = vpack.c.bf16 %v102_v9, %v101_v8  ;;  %v72_v20 = vld [vmem:[#allocation2 + $0xf8] sm:$0xff]  ;;  %v928_v51 = vmov 0.0|0.0  }
  0x25   :  { %800 = vmatprep.subr.bf16.mxu1 %v799_v56  ;;  %v54_v15 = vld [vmem:[#allocation2 + $0x68] sm:$0xff]  ;;  %v85_v16 = vld [vmem:[#allocation2 + $0x160] sm:$0xff]  ;;  %224 = vmatprep.mubr.f32.mxu0 %v35_v12  ;;  %v37_v21 = vld [vmem:[%s1071_s0 + $0x18] sm:$0xff]  ;;  %v779_v26 = vpack.c.bf16 %v72_v20, %v71_v19 }
  0x26   :  { %770 = vmatpush3.bf16.msra.mxu0 %v769_v62  ;;  %v86_v17 = vld [vmem:[#allocation2 + $0x168] sm:$0xff]  ;;  %v103_v22 = vld [vmem:[#allocation2 + $0x1f0] sm:$0xff]  ;;  %v104_v23 = vld [vmem:[#allocation2 + $0x1f8] sm:$0xff]  ;;  %294 = vmatprep.mubr.f32.mxu1 %v37_v21  ;;  %v777_v24 = vpack.c.bf16 %v54_v15, %v53_v11 }
  0x27   :  { %772 = vmatprep.subr.bf16.mxu0 %v771_v0  ;;  %v809_v25 = vpack.c.bf16 %v86_v17, %v85_v16  ;;  %v55_v27 = vld [vmem:[#allocation2 + $0x70] sm:$0xff]  ;;  %v56_v28 = vld [vmem:[#allocation2 + $0x78] sm:$0xff]  ;;  %v811_v30 = vpack.c.bf16 %v104_v23, %v103_v22  ;;  %v121_v32 = vld [vmem:[#allocation2 + $0x280] sm:$0xff] }
  0x28   :  { %802 = vmatpush3.bf16.msra.mxu1 %v801_v63  ;;  %v87_v29 = vld [vmem:[#allocation2 + $0x170] sm:$0xff]  ;;  %v88_v31 = vld [vmem:[#allocation2 + $0x178] sm:$0xff]  ;;  %v122_v33 = vld [vmem:[#allocation2 + $0x288] sm:$0xff]  ;;  %v781_v34 = vpack.c.bf16 %v56_v28, %v55_v27 }
  0x29   :  { %804 = vmatprep.subr.bf16.mxu1 %v803_v4  ;;  %v813_v35 = vpack.c.bf16 %v88_v31, %v87_v29  ;;  %v815_v36 = vpack.c.bf16 %v122_v33, %v121_v32  ;;  %v105_v37 = vld [vmem:[#allocation2 + $0x200] sm:$0xff]  ;;  %v106_v38 = vld [vmem:[#allocation2 + $0x208] sm:$0xff]  ;;  %v123_v39 = vld [vmem:[#allocation2 + $0x290] sm:$0xff] }
  0x2a   :  { %774 = vmatpush3.bf16.msra.mxu0 %v773_v10  ;;  %v124_v40 = vld [vmem:[#allocation2 + $0x298] sm:$0xff]  ;;  %v137_v41 = vld [vmem:[#allocation2 + $0x300] sm:$0xff]  ;;  %v138_v42 = vld [vmem:[#allocation2 + $0x308] sm:$0xff]  ;;  %v817_v44 = vpack.c.bf16 %v106_v38, %v105_v37 }
  0x2b   :  { %776 = vmatprep.subr.bf16.mxu0 %v775_v14  ;;  %v34_v43 = vld [vmem:[%s1071_s0] sm:$0xff]  ;;  %v36_v45 = vld [vmem:[%s1071_s0 + $0x10] sm:$0xff]  ;;  %v819_v46 = vpack.c.bf16 %v124_v40, %v123_v39  ;;  %v108_v48 = vld [vmem:[#allocation2 + $0x218] sm:$0xff]  ;;  %v848_v49 = vpack.c.bf16 %v138_v42, %v137_v41 }
  0x2c   :  { %806 = vmatpush3.bf16.msra.mxu1 %v805_v13  ;;  %v107_v47 = vld [vmem:[#allocation2 + $0x210] sm:$0xff]  ;;  %v125_v50 = vld [vmem:[#allocation2 + $0x2a0] sm:$0xff]  ;;  %v126_v52 = vld [vmem:[#allocation2 + $0x2a8] sm:$0xff] }
  0x2d   :  { %808 = vmatprep.subr.bf16.mxu1 %v807_v18  ;;  %v139_v53 = vld [vmem:[#allocation2 + $0x310] sm:$0xff]  ;;  %v140_v54 = vld [vmem:[#allocation2 + $0x318] sm:$0xff]  ;;  %v821_v55 = vpack.c.bf16 %v108_v48, %v107_v47  ;;  %v109_v56 = vld [vmem:[#allocation2 + $0x220] sm:$0xff]  ;;  %v823_v57 = vpack.c.bf16 %v126_v52, %v125_v50 }
  0x2e   :  { %778 = vmatpush3.bf16.msra.mxu0 %v777_v24  ;;  %v110_v58 = vld [vmem:[#allocation2 + $0x228] sm:$0xff]  ;;  %v851_v59 = vpack.c.bf16 %v140_v54, %v139_v53  ;;  %v127_v60 = vld [vmem:[#allocation2 + $0x2b0] sm:$0xff]  ;;  %v128_v61 = vld [vmem:[#allocation2 + $0x2b8] sm:$0xff] }
  0x2f   :  { %780 = vmatprep.subr.bf16.mxu0 %v779_v26  ;;  %v141_v62 = vld [vmem:[#allocation2 + $0x320] sm:$0xff]  ;;  %v142_v63 = vld [vmem:[#allocation2 + $0x328] sm:$0xff]  ;;  %v825_v2 = vpack.c.bf16 %v110_v58, %v109_v56  ;;  %v827_v3 = vpack.c.bf16 %v128_v61, %v127_v60  ;;  %v111_v4 = vld [vmem:[#allocation2 + $0x230] sm:$0xff] }
  0x30   :  { %810 = vmatpush3.bf16.msra.mxu1 %v809_v25  ;;  %v39_v0 = vld [vmem:[%s1071_s0 + $0x28] sm:$0xff]  ;;  %v112_v5 = vld [vmem:[#allocation2 + $0x238] sm:$0xff]  ;;  %v854_v6 = vpack.c.bf16 %v142_v63, %v141_v62  ;;  %v129_v7 = vld [vmem:[#allocation2 + $0x2c0] sm:$0xff] }
  0x31   :  { %812 = vmatprep.subr.bf16.mxu1 %v811_v30  ;;  %v130_v8 = vld [vmem:[#allocation2 + $0x2c8] sm:$0xff]  ;;  %v143_v9 = vld [vmem:[#allocation2 + $0x330] sm:$0xff]  ;;  %v144_v10 = vld [vmem:[#allocation2 + $0x338] sm:$0xff]  ;;  %v829_v11 = vpack.c.bf16 %v112_v5, %v111_v4 }
  0x32   :  { %782 = vmatpush3.bf16.msra.mxu0 %v781_v34  ;;  %v831_v12 = vpack.c.bf16 %v130_v8, %v129_v7  ;;  %v113_v13 = vld [vmem:[#allocation2 + $0x240] sm:$0xff]  ;;  %v114_v14 = vld [vmem:[#allocation2 + $0x248] sm:$0xff]  ;;  %v857_v15 = vpack.c.bf16 %v144_v10, %v143_v9  ;;  %v131_v16 = vld [vmem:[#allocation2 + $0x2d0] sm:$0xff] }
  0x33   :  { %816 = vmatprep.subr.bf16.mxu0 %v815_v36  ;;  %v132_v17 = vld [vmem:[#allocation2 + $0x2d8] sm:$0xff]  ;;  %v145_v18 = vld [vmem:[#allocation2 + $0x340] sm:$0xff]  ;;  %v146_v19 = vld [vmem:[#allocation2 + $0x348] sm:$0xff]  ;;  %v833_v20 = vpack.c.bf16 %v114_v14, %v113_v13 }
  0x34   :  { %814 = vmatpush3.bf16.msra.mxu1 %v813_v35  ;;  %v835_v21 = vpack.c.bf16 %v132_v17, %v131_v16  ;;  %v115_v22 = vld [vmem:[#allocation2 + $0x250] sm:$0xff]  ;;  %v116_v23 = vld [vmem:[#allocation2 + $0x258] sm:$0xff]  ;;  %v860_v24 = vpack.c.bf16 %v146_v19, %v145_v18  ;;  %v133_v25 = vld [vmem:[#allocation2 + $0x2e0] sm:$0xff] }
  0x35   :  { %847 = vmatprep.subr.bf16.mxu1 %v928_v51  ;;  %225 = vmatmul.mubr.f32.vlgmr.msra.gmra.mrb[0].mxu0 %v34_v43  ;;  %v134_v26 = vld [vmem:[#allocation2 + $0x2e8] sm:$0xff]  ;;  %v147_v27 = vld [vmem:[#allocation2 + $0x350] sm:$0xff]  ;;  %v148_v28 = vld [vmem:[#allocation2 + $0x358] sm:$0xff]  ;;  %v837_v29 = vpack.c.bf16 %v116_v23, %v115_v22 }
  0x36   :  { %818 = vmatpush3.bf16.msra.mxu0 %v817_v44  ;;  %364 = vmatprep.mubr.f32.mxu0 %v39_v0  ;;  %v839_v30 = vpack.c.bf16 %v134_v26, %v133_v25  ;;  %v117_v31 = vld [vmem:[#allocation2 + $0x260] sm:$0xff]  ;;  %v118_v32 = vld [vmem:[#allocation2 + $0x268] sm:$0xff]  ;;  %v863_v33 = vpack.c.bf16 %v148_v28, %v147_v27  ;;  %v135_v34 = vld [vmem:[#allocation2 + $0x2f0] sm:$0xff] }
  0x37   :  { %295 = vmatmul.mubr.f32.vlgmr.msra.gmra.mrb[0].mxu1 %v36_v45  ;;  %820 = vmatprep.subr.bf16.mxu0 %v819_v46  ;;  %v136_v35 = vld [vmem:[#allocation2 + $0x2f8] sm:$0xff]  ;;  %v149_v36 = vld [vmem:[#allocation2 + $0x360] sm:$0xff]  ;;  %v150_v37 = vld [vmem:[#allocation2 + $0x368] sm:$0xff]  ;;  %v841_v38 = vpack.c.bf16 %v118_v32, %v117_v31 }
  0x38   :  { %849 = vmatpush3.bf16.msra.mxu1 %v848_v49  ;;  %713 = vmatprep.mubr.msk.f32.mxu1 %vm929_vm0, %v930_v1  ;;  %v843_v39 = vpack.c.bf16 %v136_v35, %v135_v34  ;;  %v119_v40 = vld [vmem:[#allocation2 + $0x270] sm:$0xff]  ;;  %v120_v41 = vld [vmem:[#allocation2 + $0x278] sm:$0xff]  ;;  %v866_v42 = vpack.c.bf16 %v150_v37, %v149_v36  ;;  %v38_v47 = vld [vmem:[%s1071_s0 + $0x20] sm:$0xff] }
  0x39   :  { %850 = vmatprep.subr.bf16.mxu1 %v928_v51  ;;  %v151_v43 = vld [vmem:[#allocation2 + $0x370] sm:$0xff]  ;;  %v152_v44 = vld [vmem:[#allocation2 + $0x378] sm:$0xff]  ;;  %v845_v45 = vpack.c.bf16 %v120_v41, %v119_v40  ;;  %v441_v49 = vld [vmem:[%s1074_s3] sm:$0xff] }
  0x3a   :  { %822 = vmatpush3.bf16.msra.mxu0 %v821_v55  ;;  %v869_v46 = vpack.c.bf16 %v152_v44, %v151_v43  ;;  %v40_v48 = vld [vmem:[%s1071_s0 + $0x30] sm:$0xff]  ;;  %v442_v50 = vld [vmem:[%s1074_s3 + $0x8] sm:$0xff]  ;;  %v444_v54 = vld [vmem:[%s1074_s3 + $0x18] sm:$0xff] }
  0x3b   :  { %824 = vmatprep.subr.bf16.mxu0 %v823_v57  ;;  %v443_v52 = vld [vmem:[%s1074_s3 + $0x10] sm:$0xff]  ;;  %v872_v53 = vpack.c.bf16 %v442_v50, %v441_v49  ;;  %v445_v56 = vld [vmem:[%s1074_s3 + $0x20] sm:$0xff]  ;;  %v446_v57 = vld [vmem:[%s1074_s3 + $0x28] sm:$0xff] }
  0x3c   :  { %852 = vmatpush3.bf16.msra.mxu1 %v851_v59  ;;  %v875_v55 = vpack.c.bf16 %v444_v54, %v443_v52  ;;  %v878_v58 = vpack.c.bf16 %v446_v57, %v445_v56  ;;  %v447_v59 = vld [vmem:[%s1074_s3 + $0x30] sm:$0xff]  ;;  %v448_v60 = vld [vmem:[%s1074_s3 + $0x38] sm:$0xff]  ;;  %v449_v62 = vld [vmem:[%s1074_s3 + $0x40] sm:$0xff] }
  0x3d   :  { %853 = vmatprep.subr.bf16.mxu1 %v928_v51  ;;  %v881_v61 = vpack.c.bf16 %v448_v60, %v447_v59  ;;  %v450_v63 = vld [vmem:[%s1074_s3 + $0x48] sm:$0xff]  ;;  %v453_v4 = vld [vmem:[%s1074_s3 + $0x60] sm:$0xff]  ;;  %v455_v7 = vld [vmem:[%s1074_s3 + $0x70] sm:$0xff] }
  0x3e   :  { %826 = vmatpush3.bf16.msra.mxu0 %v825_v2  ;;  %v884_v0 = vpack.c.bf16 %v450_v63, %v449_v62  ;;  %v452_v2 = vld [vmem:[%s1074_s3 + $0x58] sm:$0xff]  ;;  %v454_v5 = vld [vmem:[%s1074_s3 + $0x68] sm:$0xff]  ;;  %v541_v26 = vld [vmem:[%s1075_s4] ss:$0 sm:$0xff] }
  0x3f   :  { %828 = vmatprep.subr.bf16.mxu0 %v827_v3  ;;  %v456_v8 = vld [vmem:[%s1074_s3 + $0x78] sm:$0xff] }
  0x40   :  { %855 = vmatpush3.bf16.msra.mxu1 %v854_v6  ;;  %v890_v6 = vpack.c.bf16 %v454_v5, %v453_v4  ;;  %v893_v9 = vpack.c.bf16 %v456_v8, %v455_v7 }
  0x41   :  { %856 = vmatprep.subr.bf16.mxu1 %v928_v51 }
  0x42   :  { %830 = vmatpush3.bf16.msra.mxu0 %v829_v11  ;;  %v540_v11 = vld [vmem:[%s1073_s2] ss:$0 sm:$0xff] }
  0x43   :  { %832 = vmatprep.subr.bf16.mxu0 %v831_v12 }
  0x44   :  { %858 = vmatpush3.bf16.msra.mxu1 %v857_v15 }
  0x45   :  { %859 = vmatprep.subr.bf16.mxu1 %v928_v51 }
  0x46   :  { %834 = vmatpush3.bf16.msra.mxu0 %v833_v20 }
  0x47   :  { %836 = vmatprep.subr.bf16.mxu0 %v835_v21 }
  0x48   :  { %861 = vmatpush3.bf16.msra.mxu1 %v860_v24 }
  0x49   :  { %862 = vmatprep.subr.bf16.mxu1 %v928_v51 }
  0x4a   :  { %838 = vmatpush3.bf16.msra.mxu0 %v837_v29 }
  0x4b   :  { %840 = vmatprep.subr.bf16.mxu0 %v839_v30 }
  0x4c   :  { %864 = vmatpush3.bf16.msra.mxu1 %v863_v33 }
  0x4d   :  { %865 = vmatprep.subr.bf16.mxu1 %v928_v51 }
  0x4e   :  { %842 = vmatpush3.bf16.msra.mxu0 %v841_v38 }
  0x4f   :  { %844 = vmatprep.subr.bf16.mxu0 %v843_v39 }
  0x50   :  { %867 = vmatpush3.bf16.msra.mxu1 %v866_v42 }
  0x51   :  { %868 = vmatprep.subr.bf16.mxu1 %v928_v51 }
  0x52   :  { %846 = vmatpush3.bf16.msra.mxu0 %v845_v45 }
  0x53   :  { %871 = vmatprep.subr.bf16.mxu0 %v928_v51 }
  0x54   :  { %870 = vmatpush3.bf16.msra.mxu1 %v869_v46 }
  0x55   :  { %365 = vmatmul.mubr.f32.vlgmr.msra.gmra.mrb[2].mxu0 %v38_v47 }
  0x56   :  { %748 = vmatprep.mubr.msk.f32.mxu0 %vm929_vm0, %v930_v1  ;;  %873 = vmatpush3.bf16.msra.mxu0 %v872_v53  ;;  %v451_v1 = vld [vmem:[%s1074_s3 + $0x50] sm:$0xff] }
  0x57   :  { %714 = vmatmul.mubr.f32.vlgmr.msra.gmra.mrb[2].mxu1 %v40_v48  ;;  %874 = vmatprep.subr.bf16.mxu0 %v928_v51  ;;  %v887_v3 = vpack.c.bf16 %v452_v2, %v451_v1 }
  0x5a   :  { %876 = vmatpush3.bf16.msra.mxu0 %v875_v55 }
  0x5b   :  { %877 = vmatprep.subr.bf16.mxu0 %v928_v51 }
  0x5e   :  { %879 = vmatpush3.bf16.msra.mxu0 %v878_v58 }
  0x5f   :  { %880 = vmatprep.subr.bf16.mxu0 %v928_v51 }
  0x62   :  { %882 = vmatpush3.bf16.msra.mxu0 %v881_v61 }
  0x63   :  { %883 = vmatprep.subr.bf16.mxu0 %v928_v51 }
  0x66   :  { %885 = vmatpush3.bf16.msra.mxu0 %v884_v0 }
  0x67   :  { %886 = vmatprep.subr.bf16.mxu0 %v928_v51 }
  0x6a   :  { %888 = vmatpush3.bf16.msra.mxu0 %v887_v3 }
  0x6b   :  { %889 = vmatprep.subr.bf16.mxu0 %v928_v51 }
  0x6e   :  { %891 = vmatpush3.bf16.msra.mxu0 %v890_v6 }
  0x6f   :  { %892 = vmatprep.subr.bf16.mxu0 %v928_v51 }
  0x72   :  { %894 = vmatpush3.bf16.msra.mxu0 %v893_v9 }
 0x108   :  { %v574_v10 = vpop.f32.mrb[0].mxu0 }
 0x109   :  { %v575_v12 = vpop.f32.mrb[1].mxu0 }
 0x10a   :  { %v609_v13 = vpop.f32.mrb[0].mxu1  ;;  %v576_v14 = vadd.f32 %v575_v12, %v574_v10 }
 0x10b   :  { %v610_v15 = vpop.f32.mrb[1].mxu1 }
 0x10c   :  { %v611_v51 = vadd.f32 %v610_v15, %v609_v13  ;;  %v227_v16 = vadd.f32 %v576_v14, %v540_v11 }
 0x10e   :  { %v297_v17 = vadd.f32 %v611_v51, %v227_v16 }
 0x128   :  { %v644_v18 = vpop.f32.mrb[2].mxu0 }
 0x129   :  { %v645_v19 = vpop.f32.mrb[3].mxu0 }
 0x12a   :  { %v436_v20 = vpop.f32.mrb[2].mxu1  ;;  %v646_v21 = vadd.f32 %v645_v19, %v644_v18 }
 0x12b   :  { %v715_v22 = vpop.f32.mrb[3].mxu1 }
 0x12c   :  { %v367_v23 = vadd.f32 %v646_v21, %v297_v17 }
 0x12e   :  { %v437_v24 = vadd.f32 %v436_v20, %v367_v23 }
 0x130   :  { %v440_v25 = vmax.f32 %v437_v24, 0.0 }
 0x132   :  { %749 = vmatmul.mubr.f32.vlgmr.msra.gmra.mrb[4].mxu0 %v440_v25 }
 0x205   :  { %v530_v27 = vpop.f32.mrb[4].mxu0 }
 0x206   :  { %v531_v28 = vadd.f32 %v541_v26, %v530_v27  ;;  %v750_v29 = vpop.f32.mrb[5].mxu0 }
 0x208   :  { %534 = vst [vmem:[%s1076_s5] sm:$0xff] %v531_v28 }
 0x209   :  { %539 = vsyncpa [#allocation3], 1 }

</bundles_post_ra>
